<compile_context>
chip_gen: v7x
topology: tpu7x:2x2x1
jax: 0.10.0
libtpu: 0.0.40
codegen_flags: <defaults>
</compile_context>

<pallas_src>
import math

import jax
import jax.numpy as jnp
from jax.experimental import pallas as pl
from jax.experimental.pallas import tpu as pltpu

# Full-precision f32 matmuls in the plain-JAX reference so the f32 comparison is tight.
jax.config.update("jax_default_matmul_precision", "highest")

_HALO = 8  # halo rows fetched on each side of an N tile (need >= 2; 8 keeps blocks aligned)


# ----------------------------------------------------------------------------------
# Kernel 1: conv->pixelnorm->silu (x2), per-tile SE partial sums, optional residual
# ----------------------------------------------------------------------------------
def _make_main_kernel(tile_n, seq_len, c_out, has_res):
    ext = tile_n + 2 * _HALO  # rows in the haloed tile

    def kernel(x_ref, xp_ref, xn_ref, w1_ref, b1_ref, w2_ref, b2_ref, *rest):
        if has_res:
            rw_ref, rb_ref, h_ref, sum_ref, res_ref = rest
        else:
            h_ref, sum_ref = rest

        start = pl.program_id(1) * tile_n

        x_main = x_ref[0]                                              # (tile_n, Cin)
        x_ext = jnp.concatenate([xp_ref[0], x_main, xn_ref[0]], axis=0)  # (ext, Cin)

        # Row validity: nominal global row of ext row i is (start - _HALO + i).
        # Only halo rows of the edge tiles can be invalid -> one (ext, 1) multiply.
        g = jax.lax.broadcasted_iota(jnp.int32, (ext, 1), 0) + (start - _HALO)
        valid = jnp.logical_and(g >= 0, g < seq_len).astype(x_ext.dtype)
        x_ext = x_ext * valid                                          # conv zero padding

        sqrt_c = jnp.sqrt(jnp.float32(c_out))

        def conv3(h, w_ref, b_ref):
            # rows i-1 / i / i+1 stacked along lanes -> single K=3*C MXU matmul.
            # The roll wrap-around only pollutes ext rows we never consume.
            h_m1 = pltpu.roll(h, shift=1, axis=0)        # row i <- h[i-1]
            h_p1 = pltpu.roll(h, shift=ext - 1, axis=0)  # row i <- h[i+1]
            stacked = jnp.concatenate([h_m1, h, h_p1], axis=-1)
            out = jnp.dot(stacked.astype(w_ref.dtype), w_ref[...],
                          preferred_element_type=jnp.float32)
            return out + b_ref[...]

        def pixel_norm_silu(h):
            # F.normalize(dim=channels) * sqrt(C), then SiLU (dropout p=0 -> no-op)
            norm = jnp.maximum(jnp.sqrt(jnp.sum(h * h, axis=-1, keepdims=True)), 1e-4)
            h = h * (sqrt_c / norm)
            return h * jax.nn.sigmoid(h)

        h1 = pixel_norm_silu(conv3(x_ext, w1_ref, b1_ref))   # valid on ext rows 1..ext-2
        h1 = h1 * valid                                      # zero padding for 2nd conv
        h2 = pixel_norm_silu(conv3(h1, w2_ref, b2_ref))      # valid on the tile rows

        h_tile = h2[_HALO:_HALO + tile_n]                    # (tile_n, Cout)
        h_ref[0] = h_tile.astype(h_ref.dtype)

        # per-tile channel sum for the SqueezeExcite mean (broadcast to 8 rows so the
        # output block stays sublane-aligned; wrapper reads row 0)
        tile_sum = jnp.sum(h_tile, axis=0, keepdims=True)    # (1, Cout)
        sum_ref[0, 0, :, :] = jnp.broadcast_to(tile_sum, (8, c_out))

        if has_res:
            res = jnp.dot(x_main.astype(rw_ref.dtype), rw_ref[...],
                          preferred_element_type=jnp.float32) + rb_ref[...]
            res_ref[0] = res.astype(res_ref.dtype)

    return kernel


# ----------------------------------------------------------------------------------
# Kernel 2: out = h * gate + residual
# ----------------------------------------------------------------------------------
def _combine_kernel(h_ref, r_ref, g_ref, o_ref):
    o_ref[0] = (h_ref[0] * g_ref[0] + r_ref[0]).astype(o_ref.dtype)


def _pick_tile_n(n):
    for cand in (1024, 512, 256, 128, 64, 32, 16, 8):
        if n % cand == 0:
            return cand
    return n


def resnet_block_forward(x_ncw, params, *, use_bf16=False, tile_n=None):
    """x_ncw: (B, Cin, N) float32 (PyTorch NCW).  Returns (B, Cout, N) float32."""
    x = jnp.transpose(x_ncw, (0, 2, 1)).astype(jnp.float32)   # (B, N, Cin)
    B, N, Cin = x.shape
    Cout = params["w1"].shape[-1]
    assert N % 8 == 0 and N >= 8, "sequence length must be a multiple of 8"

    if tile_n is None:
        tile_n = _pick_tile_n(N)
    assert N % tile_n == 0 and tile_n % 8 == 0
    n_tiles = N // tile_n
    tpb = tile_n // 8        # tile size in 8-row halo blocks
    nb8 = N // 8             # number of 8-row blocks in the sequence

    has_res = "rw" in params          # dim != dim_out -> real 1x1 conv
    if not has_res:
        assert Cin == Cout, "identity residual requires dim == dim_out"

    wdt = jnp.bfloat16 if use_bf16 else jnp.float32
    w1p = params["w1"].astype(wdt).reshape(3 * Cin, Cout)     # fused-K conv weights
    w2p = params["w2"].astype(wdt).reshape(3 * Cout, Cout)
    b1 = params["b1"].astype(jnp.float32)
    b2 = params["b2"].astype(jnp.float32)

    weights = [w1p, b1, w2p, b2]
    if has_res:
        weights += [params["rw"].astype(wdt), params["rb"].astype(jnp.float32)]

    def full_spec(arr):
        nd = arr.ndim
        return pl.BlockSpec(arr.shape, lambda b, n, _nd=nd: (0,) * _nd)

    in_specs = [
        # main x tile
        pl.BlockSpec((1, tile_n, Cin), lambda b, n: (b, n, 0)),
        # previous / next 8-row halo blocks (clamped at the edges; masked in-kernel)
        pl.BlockSpec((1, _HALO, Cin),
                     lambda b, n: (b, jnp.maximum(n * tpb - 1, 0), 0)),
        pl.BlockSpec((1, _HALO, Cin),
                     lambda b, n: (b, jnp.minimum((n + 1) * tpb, nb8 - 1), 0)),
    ] + [full_spec(w) for w in weights]

    out_shape = [jax.ShapeDtypeStruct((B, N, Cout), jnp.float32),           # h
                 jax.ShapeDtypeStruct((B, n_tiles, 8, Cout), jnp.float32)]  # partial sums
    out_specs = [pl.BlockSpec((1, tile_n, Cout), lambda b, n: (b, n, 0)),
                 pl.BlockSpec((1, 1, 8, Cout), lambda b, n: (b, n, 0, 0))]
    if has_res:
        out_shape.append(jax.ShapeDtypeStruct((B, N, Cout), jnp.float32))   # residual
        out_specs.append(pl.BlockSpec((1, tile_n, Cout), lambda b, n: (b, n, 0)))

    results = pl.pallas_call(
        _make_main_kernel(tile_n, N, Cout, has_res),
        out_shape=tuple(out_shape),
        grid=(B, n_tiles),
        in_specs=in_specs,
        out_specs=tuple(out_specs),
        compiler_params=pltpu.CompilerParams(
            dimension_semantics=("parallel", "parallel")),
    )(x, x, x, *weights)

    if has_res:
        h, partial_sums, residual = results
    else:
        h, partial_sums = results
        residual = x               # identity residual: no matmul, no extra copy

    # --- SqueezeExcite gate: global mean over N, tiny (B, C) MLP -> plain JAX ---
    avg = partial_sums[:, :, 0, :].sum(axis=1) / jnp.float32(N)     # (B, Cout)
    z = avg @ params["sew1"] + params["seb1"]
    z = z * jax.nn.sigmoid(z)
    gate = jax.nn.sigmoid(z @ params["sew2"] + params["seb2"])      # (B, Cout)
    gate = gate[:, None, :]                                         # (B, 1, Cout)

    out_bnc = pl.pallas_call(
        _combine_kernel,
        out_shape=jax.ShapeDtypeStruct((B, N, Cout), jnp.float32),
        grid=(B, n_tiles),
        in_specs=[
            pl.BlockSpec((1, tile_n, Cout), lambda b, n: (b, n, 0)),
            pl.BlockSpec((1, tile_n, Cout), lambda b, n: (b, n, 0)),
            pl.BlockSpec((1, 1, Cout), lambda b, n: (b, 0, 0)),
        ],
        out_specs=pl.BlockSpec((1, tile_n, Cout), lambda b, n: (b, n, 0)),
        compiler_params=pltpu.CompilerParams(
            dimension_semantics=("parallel", "parallel")),
    )(h, residual, gate)

    return jnp.transpose(out_bnc, (0, 2, 1))   # back to (B, Cout, N)


# ----------------------------------------------------------------------------------
# Parameters & plain-JAX reference
# ----------------------------------------------------------------------------------
def make_params(key, dim, dim_out):
    """Deterministic synthetic parameters (shapes follow the PyTorch module)."""
    dim_inner = max(dim_out // 4, 16)
    ks = jax.random.split(key, 10)
    s = 0.2
    p = {
        # conv weights as (3, Cin, Cout) taps (== torch weight (Cout, Cin, 3) transposed)
        "w1": s * jax.random.normal(ks[0], (3, dim, dim_out), jnp.float32),
        "b1": s * jax.random.normal(ks[1], (1, dim_out), jnp.float32),
        "w2": s * jax.random.normal(ks[2], (3, dim_out, dim_out), jnp.float32),
        "b2": s * jax.random.normal(ks[3], (1, dim_out), jnp.float32),
        "sew1": s * jax.random.normal(ks[4], (dim_out, dim_inner), jnp.float32),
        "seb1": s * jax.random.normal(ks[5], (1, dim_inner), jnp.float32),
        "sew2": s * jax.random.normal(ks[6], (dim_inner, dim_out), jnp.float32),
        "seb2": s * jax.random.normal(ks[7], (1, dim_out), jnp.float32),
    }
    if dim != dim_out:  # nn.Identity() when dims match -> no rw/rb at all
        p["rw"] = s * jax.random.normal(ks[8], (dim, dim_out), jnp.float32)
        p["rb"] = s * jax.random.normal(ks[9], (1, dim_out), jnp.float32)
    return p


def ref_forward(x_ncw, p):
    """Plain-JAX reference matching the PyTorch forward (mask=None)."""
    x = jnp.transpose(x_ncw, (0, 2, 1))  # (B, N, Cin)

    def conv3(h, w, b):
        hp = jnp.pad(h, ((0, 0), (1, 1), (0, 0)))
        return hp[:, :-2] @ w[0] + hp[:, 1:-1] @ w[1] + hp[:, 2:] @ w[2] + b

    def pns(h, eps=1e-4):
        nrm = jnp.maximum(jnp.sqrt(jnp.sum(h * h, axis=-1, keepdims=True)), eps)
        h = h / nrm * math.sqrt(h.shape[-1])
        return h * jax.nn.sigmoid(h)

    res = (x @ p["rw"] + p["rb"]) if "rw" in p else x
    h = pns(conv3(x, p["w1"], p["b1"]))
    h = pns(conv3(h, p["w2"], p["b2"]))
    avg = jnp.mean(h, axis=1)                                  # (B, Cout)
    z = avg @ p["sew1"] + p["seb1"]
    z = z * jax.nn.sigmoid(z)
    g = jax.nn.sigmoid(z @ p["sew2"] + p["seb2"])
    out = h * g[:, None, :] + res
    return jnp.transpose(out, (0, 2, 1))


if __name__ == "__main__":
    key = jax.random.PRNGKey(0)
    kx, kp, kx2 = jax.random.split(key, 3)

    # 1) dim != dim_out (real residual 1x1 conv), single N tile
    B, dim, dim_out, N = 2, 4, 8, 16
    x = jax.random.normal(kx, (B, dim, N), jnp.float32)        # PyTorch NCW layout
    params = make_params(kp, dim, dim_out)
    out = jax.block_until_ready(resnet_block_forward(x, params))
    ref = ref_forward(x, params)
    assert out.shape == (B, dim_out, N), out.shape
    assert jnp.allclose(out, ref, rtol=1e-3, atol=1e-4), float(jnp.max(jnp.abs(out - ref)))

    # 2) multi-tile path (8-row conv halos across tile boundaries)
    N2 = 32
    x2 = jax.random.normal(kx2, (B, dim, N2), jnp.float32)
    out2 = jax.block_until_ready(resnet_block_forward(x2, params, tile_n=8))
    ref2 = ref_forward(x2, params)
    assert jnp.allclose(out2, ref2, rtol=1e-3, atol=1e-4), float(jnp.max(jnp.abs(out2 - ref2)))

    # 3) identity residual (dim == dim_out) -> residual matmul skipped entirely
    params_same = make_params(kp, dim_out, dim_out)
    x3 = jax.random.normal(kx, (B, dim_out, N), jnp.float32)
    out3 = jax.block_until_ready(resnet_block_forward(x3, params_same))
    ref3 = ref_forward(x3, params_same)
    assert jnp.allclose(out3, ref3, rtol=1e-3, atol=1e-4), float(jnp.max(jnp.abs(out3 - ref3)))

    # 4) bf16 MXU operands (f32 accumulate, f32 elementwise path) -- loose tolerance
    out_bf16 = jax.block_until_ready(resnet_block_forward(x, params, use_bf16=True))
    assert jnp.allclose(out_bf16, ref, rtol=1e-1, atol=1e-1), float(jnp.max(jnp.abs(out_bf16 - ref)))

    print("KERNEL_OK")
</pallas_src>

<mosaic_0001>
module attributes {stable_mosaic.version = 11 : i64} {
  func.func @kernel(%arg0: i32, %arg1: i32, %arg2: memref<1x16x4xf32, #tpu.memory_space<vmem>>, %arg3: memref<1x8x4xf32, #tpu.memory_space<vmem>>, %arg4: memref<1x8x4xf32, #tpu.memory_space<vmem>>, %arg5: memref<12x8xf32, #tpu.memory_space<vmem>>, %arg6: memref<1x8xf32, #tpu.memory_space<vmem>>, %arg7: memref<24x8xf32, #tpu.memory_space<vmem>>, %arg8: memref<1x8xf32, #tpu.memory_space<vmem>>, %arg9: memref<4x8xf32, #tpu.memory_space<vmem>>, %arg10: memref<1x8xf32, #tpu.memory_space<vmem>>, %arg11: memref<1x16x8xf32, #tpu.memory_space<vmem>>, %arg12: memref<1x1x8x8xf32, #tpu.memory_space<vmem>>, %arg13: memref<1x16x8xf32, #tpu.memory_space<vmem>>) attributes {dimension_semantics = [#tpu.dimension_semantics<parallel>, #tpu.dimension_semantics<parallel>], iteration_bounds = array<i64: 2, 1>, scalar_prefetch = 0 : i64, scratch_operands = 0 : i64, tpu.core_type = #tpu.core_type<tc>, window_params = [{transform_indices = @transform_0, window_bounds = array<i64: 1, 16, 4>}, {transform_indices = @transform_1, window_bounds = array<i64: 1, 8, 4>}, {transform_indices = @transform_2, window_bounds = array<i64: 1, 8, 4>}, {pipeline_mode = #tpu.pipeline_mode<synchronous>, transform_indices = @transform_3, window_bounds = array<i64: 12, 8>}, {pipeline_mode = #tpu.pipeline_mode<synchronous>, transform_indices = @transform_4, window_bounds = array<i64: 1, 8>}, {pipeline_mode = #tpu.pipeline_mode<synchronous>, transform_indices = @transform_5, window_bounds = array<i64: 24, 8>}, {pipeline_mode = #tpu.pipeline_mode<synchronous>, transform_indices = @transform_6, window_bounds = array<i64: 1, 8>}, {pipeline_mode = #tpu.pipeline_mode<synchronous>, transform_indices = @transform_7, window_bounds = array<i64: 4, 8>}, {pipeline_mode = #tpu.pipeline_mode<synchronous>, transform_indices = @transform_8, window_bounds = array<i64: 1, 8>}, {transform_indices = @transform_9, window_bounds = array<i64: 1, 16, 8>}, {transform_indices = @transform_10, window_bounds = array<i64: 1, 1, 8, 8>}, {transform_indices = @transform_11, window_bounds = array<i64: 1, 16, 8>}]} {
    %c16_i32 = arith.constant 16 : i32
    %0 = arith.muli %arg1, %c16_i32 : i32
    %c0 = arith.constant 0 : index
    %c0_0 = arith.constant 0 : index
    %c0_1 = arith.constant 0 : index
    %1 = vector.load %arg2[%c0, %c0_0, %c0_1] : memref<1x16x4xf32, #tpu.memory_space<vmem>>, vector<1x16x4xf32>
    %2 = vector.shape_cast %1 : vector<1x16x4xf32> to vector<16x4xf32>
    %c0_2 = arith.constant 0 : index
    %c0_3 = arith.constant 0 : index
    %c0_4 = arith.constant 0 : index
    %3 = vector.load %arg3[%c0_2, %c0_3, %c0_4] : memref<1x8x4xf32, #tpu.memory_space<vmem>>, vector<1x8x4xf32>
    %4 = vector.shape_cast %3 : vector<1x8x4xf32> to vector<8x4xf32>
    %c0_5 = arith.constant 0 : index
    %c0_6 = arith.constant 0 : index
    %c0_7 = arith.constant 0 : index
    %5 = vector.load %arg4[%c0_5, %c0_6, %c0_7] : memref<1x8x4xf32, #tpu.memory_space<vmem>>, vector<1x8x4xf32>
    %6 = vector.shape_cast %5 : vector<1x8x4xf32> to vector<8x4xf32>
    %7 = tpu.concatenate %4, %2, %6 in 0 : vector<8x4xf32>, vector<16x4xf32>, vector<8x4xf32> -> vector<32x4xf32>
    %8 = tpu.iota {dimensions = array<i32: 0>} : vector<32x1xi32>
    %c8_i32 = arith.constant 8 : i32
    %9 = arith.subi %0, %c8_i32 : i32
    %10 = vector.broadcast %9 : i32 to vector<32x1xi32>
    %11 = arith.addi %8, %10 : vector<32x1xi32>
    %c0_i32 = arith.constant 0 : i32
    %12 = vector.broadcast %c0_i32 : i32 to vector<32x1xi32>
    %13 = arith.cmpi sge, %11, %12 : vector<32x1xi32>
    %c16_i32_8 = arith.constant 16 : i32
    %14 = vector.broadcast %c16_i32_8 : i32 to vector<32x1xi32>
    %15 = arith.cmpi slt, %11, %14 : vector<32x1xi32>
    %16 = arith.andi %13, %15 : vector<32x1xi1>
    %17 = arith.extui %16 : vector<32x1xi1> to vector<32x1xi32>
    %18 = arith.sitofp %17 : vector<32x1xi32> to vector<32x1xf32>
    %19 = vector.broadcast %18 : vector<32x1xf32> to vector<32x4xf32>
    %20 = arith.mulf %7, %19 : vector<32x4xf32>
    %cst = arith.constant 8.000000e+00 : f32
    %21 = math.sqrt %cst : f32
    %c1_i32 = arith.constant 1 : i32
    %22 = tpu.dynamic_rotate %20 by %c1_i32 dim 0 : vector<32x4xf32>, i32 -> vector<32x4xf32>
    %c31_i32 = arith.constant 31 : i32
    %23 = tpu.dynamic_rotate %20 by %c31_i32 dim 0 : vector<32x4xf32>, i32 -> vector<32x4xf32>
    %24 = tpu.concatenate %22, %20, %23 in 1 : vector<32x4xf32>, vector<32x4xf32>, vector<32x4xf32> -> vector<32x12xf32>
    %c0_9 = arith.constant 0 : index
    %c0_10 = arith.constant 0 : index
    %25 = vector.load %arg5[%c0_9, %c0_10] : memref<12x8xf32, #tpu.memory_space<vmem>>, vector<12x8xf32>
    %cst_11 = arith.constant dense<0.000000e+00> : vector<32x8xf32>
    %26 = tpu.matmul %24, %25, %cst_11 {dimension_numbers = #tpu.dot_dimension_numbers<[1], [0], [0], [1], [0, 0, 1, 1], [], []>, precision = #tpu.contract_precision<fp32>} : vector<32x12xf32>, vector<12x8xf32>, vector<32x8xf32> -> vector<32x8xf32>
    %c0_12 = arith.constant 0 : index
    %c0_13 = arith.constant 0 : index
    %27 = vector.load %arg6[%c0_12, %c0_13] : memref<1x8xf32, #tpu.memory_space<vmem>>, vector<1x8xf32>
    %28 = vector.broadcast %27 : vector<1x8xf32> to vector<32x8xf32>
    %29 = arith.addf %26, %28 : vector<32x8xf32>
    %30 = arith.mulf %29, %29 : vector<32x8xf32>
    %cst_14 = arith.constant dense<0.000000e+00> : vector<32xf32>
    %31 = vector.multi_reduction <add>, %30, %cst_14 [1] : vector<32x8xf32> to vector<32xf32>
    %32 = vector.shape_cast %31 : vector<32xf32> to vector<32x1xf32>
    %33 = math.sqrt %32 : vector<32x1xf32>
    %cst_15 = arith.constant 9.99999974E-5 : f32
    %34 = vector.broadcast %cst_15 : f32 to vector<32x1xf32>
    %35 = arith.maximumf %33, %34 : vector<32x1xf32>
    %36 = vector.broadcast %21 : f32 to vector<32x1xf32>
    %37 = arith.divf %36, %35 : vector<32x1xf32>
    %38 = vector.broadcast %37 : vector<32x1xf32> to vector<32x8xf32>
    %39 = arith.mulf %29, %38 : vector<32x8xf32>
    %40 = arith.negf %39 : vector<32x8xf32>
    %41 = math.exp %40 : vector<32x8xf32>
    %cst_16 = arith.constant 1.000000e+00 : f32
    %42 = vector.broadcast %cst_16 : f32 to vector<32x8xf32>
    %43 = arith.addf %42, %41 : vector<32x8xf32>
    %44 = arith.divf %42, %43 : vector<32x8xf32>
    %45 = arith.mulf %39, %44 : vector<32x8xf32>
    %46 = vector.broadcast %18 : vector<32x1xf32> to vector<32x8xf32>
    %47 = arith.mulf %45, %46 : vector<32x8xf32>
    %c1_i32_17 = arith.constant 1 : i32
    %48 = tpu.dynamic_rotate %47 by %c1_i32_17 dim 0 : vector<32x8xf32>, i32 -> vector<32x8xf32>
    %c31_i32_18 = arith.constant 31 : i32
    %49 = tpu.dynamic_rotate %47 by %c31_i32_18 dim 0 : vector<32x8xf32>, i32 -> vector<32x8xf32>
    %50 = tpu.concatenate %48, %47, %49 in 1 : vector<32x8xf32>, vector<32x8xf32>, vector<32x8xf32> -> vector<32x24xf32>
    %c0_19 = arith.constant 0 : index
    %c0_20 = arith.constant 0 : index
    %51 = vector.load %arg7[%c0_19, %c0_20] : memref<24x8xf32, #tpu.memory_space<vmem>>, vector<24x8xf32>
    %cst_21 = arith.constant dense<0.000000e+00> : vector<32x8xf32>
    %52 = tpu.matmul %50, %51, %cst_21 {dimension_numbers = #tpu.dot_dimension_numbers<[1], [0], [0], [1], [0, 0, 1, 1], [], []>, precision = #tpu.contract_precision<fp32>} : vector<32x24xf32>, vector<24x8xf32>, vector<32x8xf32> -> vector<32x8xf32>
    %c0_22 = arith.constant 0 : index
    %c0_23 = arith.constant 0 : index
    %53 = vector.load %arg8[%c0_22, %c0_23] : memref<1x8xf32, #tpu.memory_space<vmem>>, vector<1x8xf32>
    %54 = vector.broadcast %53 : vector<1x8xf32> to vector<32x8xf32>
    %55 = arith.addf %52, %54 : vector<32x8xf32>
    %56 = arith.mulf %55, %55 : vector<32x8xf32>
    %cst_24 = arith.constant dense<0.000000e+00> : vector<32xf32>
    %57 = vector.multi_reduction <add>, %56, %cst_24 [1] : vector<32x8xf32> to vector<32xf32>
    %58 = vector.shape_cast %57 : vector<32xf32> to vector<32x1xf32>
    %59 = math.sqrt %58 : vector<32x1xf32>
    %cst_25 = arith.constant 9.99999974E-5 : f32
    %60 = vector.broadcast %cst_25 : f32 to vector<32x1xf32>
    %61 = arith.maximumf %59, %60 : vector<32x1xf32>
    %62 = vector.broadcast %21 : f32 to vector<32x1xf32>
    %63 = arith.divf %62, %61 : vector<32x1xf32>
    %64 = vector.broadcast %63 : vector<32x1xf32> to vector<32x8xf32>
    %65 = arith.mulf %55, %64 : vector<32x8xf32>
    %66 = arith.negf %65 : vector<32x8xf32>
    %67 = math.exp %66 : vector<32x8xf32>
    %cst_26 = arith.constant 1.000000e+00 : f32
    %68 = vector.broadcast %cst_26 : f32 to vector<32x8xf32>
    %69 = arith.addf %68, %67 : vector<32x8xf32>
    %70 = arith.divf %68, %69 : vector<32x8xf32>
    %71 = arith.mulf %65, %70 : vector<32x8xf32>
    %72 = vector.extract_strided_slice %71 {offsets = [8, 0], sizes = [16, 8], strides = [1, 1]} : vector<32x8xf32> to vector<16x8xf32>
    %c0_27 = arith.constant 0 : index
    %c0_28 = arith.constant 0 : index
    %c0_29 = arith.constant 0 : index
    %73 = vector.load %arg11[%c0_27, %c0_28, %c0_29] : memref<1x16x8xf32, #tpu.memory_space<vmem>>, vector<1x16x8xf32>
    %74 = vector.shape_cast %73 : vector<1x16x8xf32> to vector<16x8xf32>
    %75 = vector.shape_cast %72 : vector<16x8xf32> to vector<1x16x8xf32>
    tpu.vector_store %arg11[%c0_27, %c0_28, %c0_29], %75 {strides = array<i32>} : memref<1x16x8xf32, #tpu.memory_space<vmem>>, vector<1x16x8xf32>,
    %cst_30 = arith.constant dense<0.000000e+00> : vector<8xf32>
    %76 = vector.multi_reduction <add>, %72, %cst_30 [0] : vector<16x8xf32> to vector<8xf32>
    %77 = vector.shape_cast %76 : vector<8xf32> to vector<1x8xf32>
    %78 = vector.shape_cast %77 : vector<1x8xf32> to vector<1x8xf32>
    %79 = vector.broadcast %78 : vector<1x8xf32> to vector<8x8xf32>
    %c0_31 = arith.constant 0 : index
    %c0_32 = arith.constant 0 : index
    %c0_33 = arith.constant 0 : index
    %c0_34 = arith.constant 0 : index
    %80 = vector.load %arg12[%c0_31, %c0_32, %c0_33, %c0_34] : memref<1x1x8x8xf32, #tpu.memory_space<vmem>>, vector<1x1x8x8xf32>
    %81 = vector.shape_cast %80 : vector<1x1x8x8xf32> to vector<8x8xf32>
    %82 = vector.shape_cast %79 : vector<8x8xf32> to vector<1x1x8x8xf32>
    tpu.vector_store %arg12[%c0_31, %c0_32, %c0_33, %c0_34], %82 {strides = array<i32>} : memref<1x1x8x8xf32, #tpu.memory_space<vmem>>, vector<1x1x8x8xf32>,
    %c0_35 = arith.constant 0 : index
    %c0_36 = arith.constant 0 : index
    %83 = vector.load %arg9[%c0_35, %c0_36] : memref<4x8xf32, #tpu.memory_space<vmem>>, vector<4x8xf32>
    %cst_37 = arith.constant dense<0.000000e+00> : vector<16x8xf32>
    %84 = tpu.matmul %2, %83, %cst_37 {dimension_numbers = #tpu.dot_dimension_numbers<[1], [0], [0], [1], [0, 0, 1, 1], [], []>, precision = #tpu.contract_precision<fp32>} : vector<16x4xf32>, vector<4x8xf32>, vector<16x8xf32> -> vector<16x8xf32>
    %c0_38 = arith.constant 0 : index
    %c0_39 = arith.constant 0 : index
    %85 = vector.load %arg10[%c0_38, %c0_39] : memref<1x8xf32, #tpu.memory_space<vmem>>, vector<1x8xf32>
    %86 = vector.broadcast %85 : vector<1x8xf32> to vector<16x8xf32>
    %87 = arith.addf %84, %86 : vector<16x8xf32>
    %c0_40 = arith.constant 0 : index
    %c0_41 = arith.constant 0 : index
    %c0_42 = arith.constant 0 : index
    %88 = vector.load %arg13[%c0_40, %c0_41, %c0_42] : memref<1x16x8xf32, #tpu.memory_space<vmem>>, vector<1x16x8xf32>
    %89 = vector.shape_cast %88 : vector<1x16x8xf32> to vector<16x8xf32>
    %90 = vector.shape_cast %87 : vector<16x8xf32> to vector<1x16x8xf32>
    tpu.vector_store %arg13[%c0_40, %c0_41, %c0_42], %90 {strides = array<i32>} : memref<1x16x8xf32, #tpu.memory_space<vmem>>, vector<1x16x8xf32>,
    return
  }
  func.func @transform_0(%arg0: i32, %arg1: i32) -> (i32, i32, i32) {
    %c0_i32 = arith.constant 0 : i32
    %c0_i32_0 = arith.constant 0 : i32
    return %arg0, %arg1, %c0_i32 : i32, i32, i32
  }
  func.func @transform_1(%arg0: i32, %arg1: i32) -> (i32, i32, i32) {
    %c2_i32 = arith.constant 2 : i32
    %0 = arith.muli %arg1, %c2_i32 : i32
    %c1_i32 = arith.constant 1 : i32
    %1 = arith.subi %0, %c1_i32 : i32
    %c0_i32 = arith.constant 0 : i32
    %2 = arith.maxsi %1, %c0_i32 : i32
    %c0_i32_0 = arith.constant 0 : i32
    %c0_i32_1 = arith.constant 0 : i32
    return %arg0, %2, %c0_i32_0 : i32, i32, i32
  }
  func.func @transform_2(%arg0: i32, %arg1: i32) -> (i32, i32, i32) {
    %c1_i32 = arith.constant 1 : i32
    %0 = arith.addi %arg1, %c1_i32 : i32
    %c2_i32 = arith.constant 2 : i32
    %1 = arith.muli %0, %c2_i32 : i32
    %c1_i32_0 = arith.constant 1 : i32
    %2 = arith.minsi %1, %c1_i32_0 : i32
    %c0_i32 = arith.constant 0 : i32
    %c0_i32_1 = arith.constant 0 : i32
    return %arg0, %2, %c0_i32 : i32, i32, i32
  }
  func.func @transform_3(%arg0: i32, %arg1: i32) -> (i32, i32) {
    %c0_i32 = arith.constant 0 : i32
    %c0_i32_0 = arith.constant 0 : i32
    %c0_i32_1 = arith.constant 0 : i32
    return %c0_i32, %c0_i32_0 : i32, i32
  }
  func.func @transform_4(%arg0: i32, %arg1: i32) -> (i32, i32) {
    %c0_i32 = arith.constant 0 : i32
    %c0_i32_0 = arith.constant 0 : i32
    %c0_i32_1 = arith.constant 0 : i32
    return %c0_i32, %c0_i32_0 : i32, i32
  }
  func.func @transform_5(%arg0: i32, %arg1: i32) -> (i32, i32) {
    %c0_i32 = arith.constant 0 : i32
    %c0_i32_0 = arith.constant 0 : i32
    %c0_i32_1 = arith.constant 0 : i32
    return %c0_i32, %c0_i32_0 : i32, i32
  }
  func.func @transform_6(%arg0: i32, %arg1: i32) -> (i32, i32) {
    %c0_i32 = arith.constant 0 : i32
    %c0_i32_0 = arith.constant 0 : i32
    %c0_i32_1 = arith.constant 0 : i32
    return %c0_i32, %c0_i32_0 : i32, i32
  }
  func.func @transform_7(%arg0: i32, %arg1: i32) -> (i32, i32) {
    %c0_i32 = arith.constant 0 : i32
    %c0_i32_0 = arith.constant 0 : i32
    %c0_i32_1 = arith.constant 0 : i32
    return %c0_i32, %c0_i32_0 : i32, i32
  }
  func.func @transform_8(%arg0: i32, %arg1: i32) -> (i32, i32) {
    %c0_i32 = arith.constant 0 : i32
    %c0_i32_0 = arith.constant 0 : i32
    %c0_i32_1 = arith.constant 0 : i32
    return %c0_i32, %c0_i32_0 : i32, i32
  }
  func.func @transform_9(%arg0: i32, %arg1: i32) -> (i32, i32, i32) {
    %c0_i32 = arith.constant 0 : i32
    %c0_i32_0 = arith.constant 0 : i32
    return %arg0, %arg1, %c0_i32 : i32, i32, i32
  }
  func.func @transform_10(%arg0: i32, %arg1: i32) -> (i32, i32, i32, i32) {
    %c0_i32 = arith.constant 0 : i32
    %c0_i32_0 = arith.constant 0 : i32
    %c0_i32_1 = arith.constant 0 : i32
    return %arg0, %arg1, %c0_i32, %c0_i32_0 : i32, i32, i32, i32
  }
  func.func @transform_11(%arg0: i32, %arg1: i32) -> (i32, i32, i32) {
    %c0_i32 = arith.constant 0 : i32
    %c0_i32_0 = arith.constant 0 : i32
    return %arg0, %arg1, %c0_i32 : i32, i32, i32
  }
}

</mosaic_0001>

<bundles_post_ra>
// kernel: tpu_custom_call.1
= control target key start
LH: loop header
LB: loop body
LE: loop exit
PB: predicated region body
PF: predicated region fallthrough
CT: control target
= control target key end

     0   :  { %s3850_s0 = inlined_call_operand.vmem [shape: f32[2,16,4], index: 0, kind: input, shape index: {}]   ;;  %s3851_s1 = inlined_call_operand.vmem [shape: f32[2,16,4], index: 1, kind: input, shape index: {}]   ;;  %s3852_s2 = inlined_call_operand.vmem [shape: f32[2,16,4], index: 2, kind: input, shape index: {}]   ;;  %s3853_s3 = inlined_call_operand.vmem [shape: f32[12,8], index: 3, kind: input, shape index: {}]   ;;  %s3854_s4 = inlined_call_operand.vmem [shape: f32[1,8], index: 4, kind: input, shape index: {}]   ;;  %s3855_s5 = inlined_call_operand.vmem [shape: f32[24,8], index: 5, kind: input, shape index: {}]   ;;  %s3856_s6 = inlined_call_operand.vmem [shape: f32[1,8], index: 6, kind: input, shape index: {}]   ;;  %s3857_s7 = inlined_call_operand.vmem [shape: f32[4,8], index: 7, kind: input, shape index: {}]   ;;  %s3858_s8 = inlined_call_operand.vmem [shape: f32[1,8], index: 8, kind: input, shape index: {}]   ;;  %s3859_s9 = inlined_call_operand.vmem [shape: f32[2,16,8], index: 9, kind: output, shape index: {0}]   ;;  %s3860_s10 = inlined_call_operand.hbm [shape: f32[2,1,8,8], index: 10, kind: output, shape index: {1}]   ;;  %s3861_s11 = inlined_call_operand.vmem [shape: f32[2,16,8], index: 11, kind: output, shape index: {2}]  }
   0x1   :  { %3862 = sst [smem:[#allocation5_spill]] %s3850_s0 }
   0x2   :  { %3863 = sst [smem:[#allocation6_spill]] %s3851_s1 }
   0x3   :  { %17 = vsyncpa [#allocation3], 0 }
   0x4   :  { %19 = vsyncpa [#allocation3 + $0x1], 0  ;;  %s3494_s17 = smov 0   ;;  %s3496_s18 = smov 0  }
   0x5   :  { %s3498_s19 = smov 0   ;;  %s3500_s20 = smov 0  }
   0x6   :  { %s3502_s21 = smov 0   ;;  %s3504_s22 = smov 0  }
   0x7 LB: > { %s2844_s23 = sadd.s32 4294967295, %s3428_s22   ;;  %s2845_s24 = sadd.s32 4294967294, %s3428_s22   ;;  %s3428_s22 = sphi %s3504_s22, %s25_s22   ;;  %s3424_s21 = sphi %s3502_s21, %s3872_s21   ;;  %s3420_s20 = sphi %s3500_s20, %s3871_s20   ;;  %s3416_s19 = sphi %s3498_s19, %s3870_s19   ;;  %s3412_s18 = sphi %s3496_s18, %s3869_s18   ;;  %s3408_s17 = sphi %s3494_s17, %s3868_s17  }
   0x8   : > { %s37_s25 = sadd.s32 1, %s3424_s21  ;;  %s300_s26 = sadd.s32 1, %s3416_s19 }
   0x9   : > { %p39_p0 = scmp.ge.s32.totalorder %s37_s25, 2  ;;  %p310_p1 = scmp.ne.s32.totalorder %s3416_s19, %s3412_s18 }
   0xa   : > { %p311_p2 = scmp.eq.s32.totalorder %s2844_s23, 1  ;;  %p316_p3 = scmp.ne.s32.totalorder %s3412_s18, %s3408_s17 }
   0xb   : > { %s3874_s25 = smov (%p39_p0, %s37_s25), 0  ;;  %p317_p5 = scmp.eq.s32.totalorder %s2845_s24, 1 }
   0xc   : > { %p3534_p4 = por %p311_p2, %p310_p1  ;;  %s295_s28 = ssub.s32 %s3424_s21, %s3874_s25 }
   0xd   : > { %p2848_p6 = scmp.ge.s32.totalorder %s3428_s22, 1  ;;  %p298_p7 = scmp.eq.s32.totalorder %s295_s28, 0 }
   0xe   : > { %p3541_p8 = por %p317_p5, %p316_p3  ;;  %p432_p9 = scmp.lt.s32.totalorder %s3428_s22, 3 }
   0xf   : > { %s3547_s30 = scalar_select %p298_p7, %s3416_s19, %s300_s26  }
  0x10   : > { %p433_p10 = pnand %p2848_p6, %p432_p9 }
  0x11   : > { %p519_p11 = scmp.lt.s32.totalorder (!%p433_p10), %s3420_s20, 1  ;;  %v585_v0 = vlaneseq (!%p433_p10)  ;;  %v680_v1 = vld [vmem:[%s3853_s3] sm:$0xff] (!%p433_p10)  ;;  %v681_v2 = vld [vmem:[%s3853_s3 + $0x8] sm:$0xf] (!%p433_p10)  ;;  %vm702_vm0 = vcmask (!%p433_p10), 1043456   ;;  %s3866_s0 = sld [smem:[#allocation5_spill]] (!%p433_p10) }
  0x12   : > { %436 = sbr.rel (%p433_p10) target bundleno = 1246 (0x4de), region = 56  ;;  %v707_v3 = vand.u32 (!%p433_p10), 4294901760, %v680_v1  ;;  %v704_v4 = vsel (!%p433_p10), %vm702_vm0, %v681_v2, 0  ;;  %s3867_s1 = sld [smem:[#allocation6_spill]] (!%p433_p10)  ;;  %vm670_vm3 = vcmask (!%p433_p10), 31744   ;;  %vm675_vm4 = vcmask (!%p433_p10), 64512  }
  0x13   : > { %v3558_v5 = vshrl.u32 (!%p433_p10), %v585_v0, 7  ;;  %v710_v6 = vand.u32 (!%p433_p10), 4294901760, %v704_v4  ;;  %s3431_s12 = smov (!%p433_p10), 8   ;;  %vm689_vm5 = vcmask (!%p433_p10), 97280   ;;  %vm1438_vm14 = vcmask (!%p433_p10), 130048   ;;  %s504_s26 = sand.u32 (!%p433_p10), 1, %s3412_s18  }
  0x14   : > { %v815_v7 = vsub.f32 (!%p433_p10), %v680_v1, %v707_v3  ;;  %vm1453_vm15 = vcmask (!%p433_p10), 195584  }
  0x15   : > { %v822_v9 = vsub.f32 (!%p433_p10), %v704_v4, %v710_v6  ;;  %v3575_v12 = vpack.c.bf16 (!%p433_p10), %v710_v6, %v707_v3  ;;  %vm633_vm1 = vcmp.lt.s32.totalorder (!%p433_p10), %v3558_v5, 7  ;;  %vm624_vm2 = vcmp.lt.s32.totalorder (!%p433_p10), %v3558_v5, 1 }
  0x16   : > { %v816_v8 = vand.u32 (!%p433_p10), 4294901760, %v815_v7 }
  0x17   : > { %3139 = vmatprep.subr.bf16.mxu1 (!%p433_p10), %v3575_v12  ;;  %v823_v22 = vand.u32 (!%p433_p10), 4294901760, %v822_v9  ;;  %v3146_v38 = vpack.c.bf16 (!%p433_p10), %v822_v9, %v815_v7 }
  0x18   : > { %v817_v21 = vsub.f32 (!%p433_p10), %v815_v7, %v816_v8  ;;  %3141 = vmatpush3.bf16.msra.mxu1 (!%p433_p10), %v3575_v12 }
  0x19   : > { %s520_s16 = scalar_select %p519_p11, %s3420_s20, 1  ;;  %v824_v29 = vsub.f32 %v822_v9, %v823_v22  ;;  %v3154_v40 = vpack.c.bf16 %v823_v22, %v816_v8 }
  0x1a   : > { %v818_v28 = vand.u32 4294901760, %v817_v21 }
  0x1b   : > { %s3560_s23 = sshll.u32 %s520_s16, 4  ;;  %s3430_s16 = smov 4   ;;  %v825_v34 = vand.u32 4294901760, %v824_v29 }
  0x1c   : > { %s526_s28 = scalar_lea.vmem %s3866_s0, %s3560_s23  ;;  %s539_s14 = scalar_lea.vmem %s3867_s1, %s3560_s23 }
  0x1d   : > { %v3566_v10 = vld [vmem:[%s526_s28] sm:$0xff]  ;;  %v3568_v11 = vld [vmem:[%s526_s28 + $0x8] sm:$0xff]  ;;  %s2876_s15 = sadd.s32 8, %s3560_s23  ;;  %v3142_v36 = vpack.c.bf16 %v825_v34, %v818_v28  ;;  %s568_s24 = scalar_lea.vmem %s3859_s9, %s3560_s23 }
  0x1e   : > { %644 = vrot.lane.b32.xlu0 %v3566_v10, %s3430_s16  ;;  %v630_v13 = vrot.slane %v3566_v10, 1  ;;  %v583_v14 = vld [vmem:[%s539_s14] sm:$0xff]  ;;  %s555_s28 = scalar_lea.vmem %s3852_s2, %s2876_s15  ;;  %v621_v15 = vrot.slane %v3566_v10, 7  ;;  %v631_v16 = vrot.slane %v3568_v11, 1  ;;  %v622_v19 = vrot.slane %v3568_v11, 7 }
  0x1f   : > { %v616_v17 = vmul.f32 0.0, %v583_v14  ;;  %v584_v18 = vld [vmem:[%s555_s28] sm:$0xff]  ;;  %3143 = vmatprep.subr.bf16.mxu0 %v3142_v36  ;;  %s3432_s28 = smov 16   ;;  %v2120_v5 = vsel %vm670_vm3, %v3566_v10, 0 }
  0x20   : > { %v619_v20 = vmul.f32 0.0, %v584_v18  ;;  %v635_v23 = vsel %vm633_vm1, %v630_v13, %v631_v16  ;;  %v626_v26 = vsel %vm624_vm2, %v621_v15, %v622_v19  ;;  %3145 = vmatpush3.bf16.msra.mxu0 %v3142_v36 }
  0x21   : > { %v629_v24 = vrot.slane %v616_v17, 1  ;;  %v620_v25 = vrot.slane %v616_v17, 7  ;;  %660 = vrot.lane.b32.xlu1 %v635_v23, %s3431_s12  ;;  %3147 = vmatprep.subr.bf16.mxu0 %v3146_v38 }
  0x22   : > { %642 = vrot.lane.b32.xlu0 %v616_v17, %s3430_s16  ;;  %v623_v27 = vrot.slane %v619_v20, 7  ;;  %v632_v31 = vrot.slane %v619_v20, 1 }
  0x23   : > { %v636_v30 = vsel %vm633_vm1, %v629_v24, %v630_v13  ;;  %v627_v32 = vsel %vm624_vm2, %v620_v25, %v621_v15 }
  0x24   : > { %v628_v33 = vsel %vm624_vm2, %v623_v27, %v620_v25  ;;  %v625_v35 = vsel %vm624_vm2, %v622_v19, %v623_v27  ;;  %v634_v37 = vsel %vm633_vm1, %v631_v16, %v632_v31  ;;  %v637_v39 = vsel %vm633_vm1, %v632_v31, %v629_v24  ;;  %v2860_v25 = vld [vmem:[%s3854_s4] ss:$0 sm:$0xff] }
  0x25   : > { %658 = vrot.lane.b32.xlu1 %v636_v30, %s3431_s12 }
  0x26   : > { %646 = vrot.lane.b32.xlu0 %v3568_v11, %s3430_s16 }
  0x29   : > { %648 = vrot.lane.b32.xlu1 %v619_v20, %s3430_s16 }
  0x2a   : > { %662 = vrot.lane.b32.xlu0 %v634_v37, %s3431_s12 }
  0x2d   : > { %664 = vrot.lane.b32.xlu1 %v637_v39, %s3431_s12 }
  0x90   : > { %v645_v41 = vpop.permute.xlu0 %644 }
  0x91   : > { %v672_v42 = vsel %vm670_vm3, %v627_v32, %v645_v41 }
  0x93   : > { %v661_v43 = vpop.permute.xlu1 %660 }
  0x94   : > { %v643_v44 = vpop.permute.xlu0 %642  ;;  %v677_v45 = vsel %vm675_vm4, %v672_v42, %v661_v43 }
  0x95   : > { %v694_v46 = vsel %vm689_vm5, %v677_v45, 0  ;;  %v671_v47 = vsel %vm670_vm3, %v628_v33, %v643_v44 }
  0x96   : > { %v783_v48 = vand.u32 4294901760, %v694_v46 }
  0x97   : > { %v659_v49 = vpop.permute.xlu1 %658 }
  0x98   : > { %v647_v50 = vpop.permute.xlu0 %646  ;;  %v784_v51 = vsub.f32 %v694_v46, %v783_v48  ;;  %v676_v52 = vsel %vm675_vm4, %v671_v47, %v659_v49 }
  0x99   : > { %v691_v53 = vsel %vm689_vm5, %v676_v52, 0  ;;  %v673_v54 = vsel %vm670_vm3, %v626_v26, %v647_v50 }
  0x9a   : > { %v773_v55 = vand.u32 4294901760, %v691_v53  ;;  %v785_v58 = vand.u32 4294901760, %v784_v51 }
  0x9b   : > { %v649_v56 = vpop.permute.xlu1 %648 }
  0x9c   : > { %v663_v57 = vpop.permute.xlu0 %662  ;;  %v774_v59 = vsub.f32 %v691_v53, %v773_v55  ;;  %2990 = vmatprep.mubr.f32.mxu0 %v773_v55  ;;  %v674_v0 = vsel %vm670_vm3, %v625_v35, %v649_v56  ;;  %v786_v2 = vsub.f32 %v784_v51, %v785_v58 }
  0x9d   : > { %v678_v60 = vsel %vm675_vm4, %v673_v54, %v663_v57  ;;  %2991 = vmatmul.mubr.f32.vlgmr.msra.gmra.mrb[0].mxu0 %v783_v48 }
  0x9e   : > { %v697_v61 = vsel %vm689_vm5, %v678_v60, 0  ;;  %3149 = vmatpush3.bf16.msra.mxu0 %v3146_v38  ;;  %v775_v63 = vand.u32 4294901760, %v774_v59  ;;  %v787_v14 = vand.u32 4294901760, %v786_v2 }
  0x9f   : > { %v793_v62 = vand.u32 4294901760, %v697_v61  ;;  %v665_v1 = vpop.permute.xlu1 %664  ;;  %3151 = vmatprep.subr.bf16.mxu0 %v3575_v12 }
  0xa0   : > { %v679_v4 = vsel %vm675_vm4, %v674_v0, %v665_v1  ;;  %v776_v6 = vsub.f32 %v774_v59, %v775_v63 }
  0xa1   : > { %v794_v3 = vsub.f32 %v697_v61, %v793_v62  ;;  %2993 = vmatprep.mubr.f32.mxu0 %v793_v62  ;;  %v700_v7 = vsel %vm689_vm5, %v679_v4, 0 }
  0xa2   : > { %v803_v8 = vand.u32 4294901760, %v700_v7  ;;  %v777_v9 = vand.u32 4294901760, %v776_v6 }
  0xa3   : > { %v795_v13 = vand.u32 4294901760, %v794_v3 }
  0xa4   : > { %v804_v15 = vsub.f32 %v700_v7, %v803_v8  ;;  %2980 = vmatprep.mubr.f32.mxu1 %v777_v9  ;;  %2994 = vmatmul.mubr.f32.gmra.mrb[2].mxu0 %v803_v8 }
  0xa5   : > { %v796_v16 = vsub.f32 %v794_v3, %v795_v13  ;;  %2981 = vmatmul.mubr.f32.vlgmr.msra.gmra.mrb[0].mxu1 %v787_v14  ;;  %3000 = vmatprep.mubr.f32.mxu0 %v774_v59 }
  0xa6   : > { %v805_v18 = vand.u32 4294901760, %v804_v15 }
  0xa7   : > { %v797_v17 = vand.u32 4294901760, %v796_v16 }
  0xa8   : > { %3001 = vmatmul.mubr.f32.vlgmr.msra.gmra.mrb[0].mxu0 %v784_v51  ;;  %v806_v19 = vsub.f32 %v804_v15, %v805_v18 }
  0xa9   : > { %2983 = vmatprep.mubr.f32.mxu1 %v797_v17  ;;  %3153 = vmatpush3.bf16.msra.mxu0 %v3575_v12 }
  0xaa   : > { %3003 = vmatprep.mubr.f32.mxu0 %v794_v3  ;;  %v807_v20 = vand.u32 4294901760, %v806_v19  ;;  %3155 = vmatprep.subr.bf16.mxu0 %v3154_v40 }
  0xac   : > { %2984 = vmatmul.mubr.f32.gmra.mrb[2].mxu1 %v807_v20  ;;  %3004 = vmatmul.mubr.f32.gmra.mrb[2].mxu0 %v804_v15 }
  0xad   : > { %3010 = vmatprep.mubr.f32.mxu0 %v775_v63 }
  0xb0   : > { %3011 = vmatmul.mubr.f32.vlgmr.msra.gmra.mrb[0].mxu0 %v785_v58 }
  0xb1   : > { %3157 = vmatpush3.bf16.msra.mxu0 %v3154_v40  ;;  %3013 = vmatprep.mubr.f32.mxu0 %v795_v13 }
  0xb2   : > { %3159 = vmatprep.subr.bf16.mxu0 %v3575_v12 }
  0xb4   : > { %3014 = vmatmul.mubr.f32.gmra.mrb[2].mxu0 %v805_v18 }
  0xb5   : > { %3020 = vmatprep.mubr.f32.mxu0 %v773_v55 }
  0xb8   : > { %3021 = vmatmul.mubr.f32.vlgmr.msra.gmra.mrb[0].mxu0 %v783_v48 }
  0xb9   : > { %3161 = vmatpush3.bf16.msra.mxu0 %v3575_v12  ;;  %3023 = vmatprep.mubr.f32.mxu0 %v793_v62 }
  0xbc   : > { %3024 = vmatmul.mubr.f32.gmra.mrb[2].mxu0 %v803_v8 }
  0xbd   : > { %3030 = vmatprep.mubr.f32.mxu0 %v773_v55 }
  0xc0   : > { %3031 = vmatmul.mubr.f32.vlgmr.msra.gmra.mrb[0].mxu0 %v783_v48 }
  0xc1   : > { %3033 = vmatprep.mubr.f32.mxu0 %v793_v62 }
  0xc4   : > { %3034 = vmatmul.mubr.f32.gmra.mrb[2].mxu0 %v803_v8 }
 0x178   : > { %v2982_v21 = vpop.f32.mrb[0].mxu1 }
 0x179   : > { %v779_v22 = vpop.f32.mrb[1].mxu1  ;;  %v790_v26 = vadd.f32 %v2982_v21, %v2860_v25 }
 0x17a   : > { %v780_v27 = vadd.f32 %v2860_v25, %v779_v22 }
 0x17f   : > { %v2985_v23 = vpop.f32.mrb[2].mxu1 }
 0x180   : > { %v799_v24 = vpop.f32.mrb[3].mxu1  ;;  %v810_v31 = vadd.f32 %v2985_v23, %v2860_v25 }
 0x181   : > { %v800_v33 = vadd.f32 %v2860_v25, %v799_v24 }
 0x193   : > { %v3032_v28 = vpop.f32.mrb[0].mxu0 }
 0x194   : > { %v3633_v29 = vadd.f32 %v3032_v28, %v790_v26  ;;  %v1272_v12 = vpop.f32.mrb[1].mxu0 }
 0x195   : > { %v3635_v30 = vadd.f32 %v1272_v12, %v780_v27 }
 0x196   : > { %v1295_v32 = vmul.f32 %v3633_v29, %v3633_v29 }
 0x197   : > { %v3035_v34 = vpop.f32.mrb[2].mxu0  ;;  %v1294_v35 = vmul.f32 %v3635_v30, %v3635_v30 }
 0x198   : > { %v3641_v36 = vadd.f32 %v3035_v34, %v810_v31  ;;  %v1284_v37 = vpop.f32.mrb[3].mxu0  ;;  %v1301_v38 = vsel %vm675_vm4, %v1295_v32, 0.0 }
 0x199   : > { %v3644_v39 = vadd.f32 %v1284_v37, %v800_v33  ;;  %1302 = vadd.xlane.f32.xlu1 %v1301_v38  ;;  %v1298_v40 = vsel %vm675_vm4, %v1294_v35, 0.0 }
 0x19a   : > { %1299 = vadd.xlane.f32.xlu0 %v1298_v40  ;;  %v1297_v43 = vmul.f32 %v3641_v36, %v3641_v36 }
 0x19b   : > { %v1296_v41 = vmul.f32 %v3644_v39, %v3644_v39 }
 0x19c   : > { %v1307_v44 = vsel %vm675_vm4, %v1297_v43, 0.0 }
 0x19d   : > { %v1304_v42 = vsel %vm675_vm4, %v1296_v41, 0.0 }
 0x19e   : > { %1305 = vadd.xlane.f32.xlu0 %v1304_v42 }
 0x1a2   : > { %1308 = vadd.xlane.f32.xlu0 %v1307_v44 }
 0x226   : > { %v1303_v45 = vpop.xlane.xlu1 %1302 }
 0x227   : > { %3302 = vrsqrt.f32 %v1303_v45  ;;  %v1300_v46 = vpop.xlane.xlu0 %1299  ;;  %vm1319_vm6 = vcmp.eq.f32.partialorder %v1303_v45, inf  ;;  %v1322_v52 = vand.u32 2147483648, %v1303_v45  ;;  %vm1321_vm7 = vcmp.eq.f32.partialorder %v1303_v45, 0.0 }
 0x228   : > { %3304 = vrsqrt.f32 %v1300_v46  ;;  %vm1312_vm8 = vcmp.eq.f32.partialorder %v1300_v46, inf  ;;  %v1315_v55 = vand.u32 2147483648, %v1300_v46  ;;  %vm1314_vm9 = vcmp.eq.f32.partialorder %v1300_v46, 0.0 }
 0x22b   : > { %v1306_v47 = vpop.xlane.xlu0 %1305 }
 0x22c   : > { %3306 = vrsqrt.f32 %v1306_v47  ;;  %vm1326_vm10 = vcmp.eq.f32.partialorder %v1306_v47, inf  ;;  %v1329_v63 = vand.u32 2147483648, %v1306_v47  ;;  %vm1328_vm11 = vcmp.eq.f32.partialorder %v1306_v47, 0.0 }
 0x22f   : > { %v1309_v48 = vpop.xlane.xlu0 %1308 }
 0x230   : > { %3308 = vrsqrt.f32 %v1309_v48  ;;  %vm1333_vm12 = vcmp.eq.f32.partialorder %v1309_v48, inf  ;;  %v1336_v6 = vand.u32 2147483648, %v1309_v48  ;;  %vm1335_vm13 = vcmp.eq.f32.partialorder %v1309_v48, 0.0 }
 0x231   : > { %v3303_v49 = vpop.eup %3302 }
 0x232   : > { %v3305_v50 = vpop.eup %3304  ;;  %v1318_v51 = vmul.f32 %v3303_v49, %v1303_v45 }
 0x233   : > { %v1311_v53 = vmul.f32 %v3305_v50, %v1300_v46 }
 0x234   : > { %v1320_v54 = vsel %vm1319_vm6, %v1303_v45, %v1318_v51 }
 0x235   : > { %v1313_v56 = vsel %vm1312_vm8, %v1300_v46, %v1311_v53  ;;  %v1323_v57 = vsel %vm1321_vm7, %v1322_v52, %v1320_v54 }
 0x236   : > { %v3307_v58 = vpop.eup %3306  ;;  %v1339_v59 = vmax.f32 %v1323_v57, 0.0001  ;;  %v1316_v60 = vsel %vm1314_vm9, %v1315_v55, %v1313_v56 }
 0x237   : > { %v1325_v61 = vmul.f32 %v3307_v58, %v1306_v47  ;;  %v1338_v62 = vmax.f32 %v1316_v60, 0.0001 }
 0x238   : > { %3310 = vrcp.f32 %v1339_v59 }
 0x239   : > { %v1327_v0 = vsel %vm1326_vm10, %v1306_v47, %v1325_v61  ;;  %3312 = vrcp.f32 %v1338_v62  ;;  %v1443_v47 = vld [vmem:[%s3855_s5] sm:$0xff] }
 0x23a   : > { %v3309_v1 = vpop.eup %3308  ;;  %v1330_v2 = vsel %vm1328_vm11, %v1329_v63, %v1327_v0  ;;  %v1467_v49 = vand.u32 4294901760, %v1443_v47  ;;  %v3683_v63 = vld [vmem:[%s3855_s5 + $0x10] sm:$0xff] }
 0x23b   : > { %v1332_v3 = vmul.f32 %v3309_v1, %v1309_v48  ;;  %v1340_v4 = vmax.f32 %v1330_v2, 0.0001  ;;  %v3686_v1 = vand.u32 4294901760, %v3683_v63 }
 0x23c   : > { %v1574_v56 = vsub.f32 %v1443_v47, %v1467_v49 }
 0x23d   : > { %v1334_v7 = vsel %vm1333_vm12, %v1309_v48, %v1332_v3  ;;  %3314 = vrcp.f32 %v1340_v4  ;;  %v1444_v48 = vld [vmem:[%s3855_s5 + $0x8] sm:$0xff] }
 0x23e   : > { %v1337_v8 = vsel %vm1335_vm13, %v1336_v6, %v1334_v7  ;;  %v1470_v50 = vand.u32 4294901760, %v1444_v48  ;;  %v1575_v60 = vand.u32 4294901760, %v1574_v56 }
 0x23f   : > { %v1341_v9 = vmax.f32 %v1337_v8, 0.0001 }
 0x240   : > { %v3672_v55 = vpack.c.bf16 %v1470_v50, %v1467_v49  ;;  %v1581_v57 = vsub.f32 %v1444_v48, %v1470_v50  ;;  %v1576_v2 = vsub.f32 %v1574_v56, %v1575_v60 }
 0x241   : > { %3316 = vrcp.f32 %v1341_v9 }
 0x242   : > { %v3311_v13 = vpop.eup %3310  ;;  %3163 = vmatprep.subr.bf16.mxu1 %v3672_v55  ;;  %v1582_v61 = vand.u32 4294901760, %v1581_v57  ;;  %v1577_v7 = vand.u32 4294901760, %v1576_v2 }
 0x243   : > { %v3313_v14 = vpop.eup %3312  ;;  %v1345_v15 = vmul.f32 2.828427, %v3311_v13  ;;  %3165 = vmatpush3.bf16.msra.mxu1 %v3672_v55 }
 0x244   : > { %v1343_v16 = vmul.f32 2.828427, %v3313_v14  ;;  %v1583_v3 = vsub.f32 %v1581_v57, %v1582_v61  ;;  %3040 = vmatprep.subr.mxu1 %v3686_v1 }
 0x245   : > { %v1351_v17 = vmul.f32 %v3633_v29, %v1345_v15 }
 0x246   : > { %v1350_v18 = vmul.f32 %v3635_v30, %v1343_v16  ;;  %v1584_v8 = vand.u32 4294901760, %v1583_v3 }
 0x247   : > { %v3315_v19 = vpop.eup %3314  ;;  %v2862_v20 = vmul.f32 -1.442695, %v1351_v17  ;;  %3041 = vmatpush3.msra.mxu1 %v3686_v1 }
 0x248   : > { %v2861_v21 = vmul.f32 -1.442695, %v1350_v18  ;;  %v1347_v22 = vmul.f32 2.828427, %v3315_v19  ;;  %v3701_v16 = vpack.c.bf16 %v1584_v8, %v1577_v7  ;;  %v3708_v19 = vpack.c.bf16 %v1582_v61, %v1575_v60 }
 0x249   : > { %3318 = vpow2.f32 %v2862_v20  ;;  %v2111_v20 = vld [vmem:[%s3857_s7] sm:$0xf] }
 0x24a   : > { %3320 = vpow2.f32 %v2861_v21  ;;  %v1352_v23 = vmul.f32 %v3644_v39, %v1347_v22  ;;  %3167 = vmatprep.subr.bf16.mxu1 %v3701_v16  ;;  %v2126_v21 = vsel %vm702_vm0, %v2111_v20, 0  ;;  %v2123_v22 = vsel %vm670_vm3, %v3568_v11, 0 }
 0x24b   : > { %v3317_v24 = vpop.eup %3316 }
 0x24c   : > { %v2863_v25 = vmul.f32 -1.442695, %v1352_v23  ;;  %v1349_v26 = vmul.f32 2.828427, %v3317_v24  ;;  %v2204_v24 = vand.u32 4294901760, %v2123_v22 }
 0x24e   : > { %3322 = vpow2.f32 %v2863_v25  ;;  %v1353_v27 = vmul.f32 %v3641_v36, %v1349_v26  ;;  %v2194_v26 = vand.u32 4294901760, %v2120_v5 }
 0x250   : > { %v2864_v28 = vmul.f32 -1.442695, %v1353_v27  ;;  %3115 = vmatprep.mubr.f32.mxu0 %v2194_v26 }
 0x252   : > { %3324 = vpow2.f32 %v2864_v28 }
 0x253   : > { %v3319_v12 = vpop.eup %3318 }
 0x254   : > { %v3321_v29 = vpop.eup %3320  ;;  %v1367_v31 = vadd.f32 1.0, %v3319_v12  ;;  %v2195_v12 = vsub.f32 %v2120_v5, %v2194_v26 }
 0x255   : > { %v1366_v30 = vadd.f32 1.0, %v3321_v29 }
 0x256   : > { %3326 = vrcp.f32 %v1367_v31 }
 0x257   : > { %3328 = vrcp.f32 %v1366_v30  ;;  %v2196_v30 = vand.u32 4294901760, %v2195_v12 }
 0x258   : > { %v3323_v32 = vpop.eup %3322 }
 0x259   : > { %v1368_v33 = vadd.f32 1.0, %v3323_v32  ;;  %v3723_v11 = vsub.f32 %v2195_v12, %v2196_v30 }
 0x25b   : > { %3330 = vrcp.f32 %v1368_v33 }
 0x25c   : > { %v3325_v34 = vpop.eup %3324 }
 0x25d   : > { %v1369_v35 = vadd.f32 1.0, %v3325_v34 }
 0x25f   : > { %3332 = vrcp.f32 %v1369_v35 }
 0x260   : > { %v3327_v37 = vpop.eup %3326 }
 0x261   : > { %v3329_v38 = vpop.eup %3328  ;;  %v1379_v39 = vmul.f32 %v3327_v37, %v1351_v17 }
 0x262   : > { %v1378_v40 = vmul.f32 %v3329_v38, %v1350_v18  ;;  %v3706_v18 = vpack.c.bf16 %v1581_v57, %v1574_v56 }
 0x263   : > { %1408 = vrot.lane.b32.xlu0 %v1379_v39, %s3431_s12  ;;  %v1395_v42 = vrot.slane %v1379_v39, 1  ;;  %v1387_v46 = vrot.slane %v1379_v39, 7 }
 0x264   : > { %v1382_v36 = vmul.f32 0.0, %v1378_v40 }
 0x265   : > { %v3331_v41 = vpop.eup %3330 }
 0x266   : > { %1406 = vrot.lane.b32.xlu1 %v1382_v36, %s3431_s12  ;;  %v1380_v43 = vmul.f32 %v3331_v41, %v1352_v23  ;;  %v1394_v44 = vrot.slane %v1382_v36, 1  ;;  %v1386_v45 = vrot.slane %v1382_v36, 7  ;;  %v3716_v23 = vand.u32 4294901760, %v2126_v21 }
 0x268   : > { %1410 = vrot.lane.b32.xlu0 %v1380_v43, %s3431_s12  ;;  %v1400_v51 = vsel %vm633_vm1, %v1394_v44, %v1395_v42  ;;  %v3670_v52 = vsel %vm624_vm2, %v1386_v45, %v1387_v46  ;;  %v1388_v53 = vrot.slane %v1380_v43, 7  ;;  %v1396_v0 = vrot.slane %v1380_v43, 1 }
 0x269   : > { %v3333_v54 = vpop.eup %3332  ;;  %v2216_v25 = vsub.f32 %v2126_v21, %v3716_v23 }
 0x26a   : > { %1422 = vrot.lane.b32.xlu1 %v1400_v51, %s3432_s28  ;;  %v1381_v58 = vmul.f32 %v3333_v54, %v1353_v27  ;;  %v3676_v59 = vsel %vm624_vm2, %v1387_v46, %v1388_v53  ;;  %v1399_v15 = vsel %vm633_vm1, %v1395_v42, %v1396_v0  ;;  %v2205_v27 = vsub.f32 %v2123_v22, %v2204_v24 }
 0x26b   : > { %v2217_v28 = vand.u32 4294901760, %v2216_v25  ;;  %v1588_v46 = vsub.f32 %v3683_v63, %v3686_v1 }
 0x26c   : > { %v1385_v62 = vmul.f32 0.0, %v1381_v58  ;;  %v2206_v29 = vand.u32 4294901760, %v2205_v27 }
 0x26d   : > { %v2218_v31 = vsub.f32 %v2216_v25, %v2217_v28 }
 0x26e   : > { %1412 = vrot.lane.b32.xlu1 %v1385_v62, %s3431_s12  ;;  %v1397_v4 = vrot.slane %v1385_v62, 1  ;;  %v1389_v6 = vrot.slane %v1385_v62, 7  ;;  %v3721_v32 = vsub.f32 %v2205_v27, %v2206_v29  ;;  %s578_s12 = scalar_lea.vmem %s3861_s11, %s3560_s23  ;;  %s2870_s23 = sshll.u32 %s3420_s20, 7 }
 0x26f   : > { %v2219_v33 = vand.u32 4294901760, %v2218_v31  ;;  %s3802_s16 = scalar_lea.hbm %s3860_s10, %s2870_s23  ;;  %s3433_s20 = smov [#allocation2]  }
 0x270   : > { %v1398_v9 = vsel %vm633_vm1, %v1396_v0, %v1397_v4  ;;  %v1393_v13 = vsel %vm624_vm2, %v1389_v6, %v1386_v45  ;;  %v3696_v14 = vsel %vm624_vm2, %v1388_v53, %v1389_v6  ;;  %v1401_v17 = vsel %vm633_vm1, %v1397_v4, %v1394_v44 }
 0x271   : > { %1426 = vrot.lane.b32.xlu0 %v1398_v9, %s3432_s28  ;;  %3113 = vmatprep.subr.mxu0 %v2219_v33 }
 0x272   : > { %1424 = vrot.lane.b32.xlu1 %v1399_v15, %s3432_s28  ;;  %3114 = vmatpush3.msra.mxu0 %v2219_v33 }
 0x273   : > { %3116 = vmatmul.mubr.f32.vlgmr.msra.gmra.mrb[4].mxu0 %v2204_v24  ;;  %3118 = vmatprep.subr.mxu0 %v2216_v25 }
 0x274   : > { %3119 = vmatpush3.msra.mxu0 %v2216_v25  ;;  %3120 = vmatprep.mubr.f32.mxu0 %v2195_v12 }
 0x275   : > { %3123 = vmatprep.subr.mxu0 %v3716_v23 }
 0x276   : > { %1428 = vrot.lane.b32.xlu1 %v1401_v17, %s3432_s28  ;;  %s2849_s28 = sshll.u32 %s504_s26, 3 }
 0x277   : > { %s506_s13 = scalar_lea.vmem [#allocation2], %s2849_s28  ;;  %s3354_s28 = sshll.u32 %s3433_s20, 4  ;;  %s3355_s28 = int_to_ptr.vmem [resolvable:$false] %s3354_s28 }
 0x278   : > { %s2656_s14 = sshll.u32 %s506_s13, 4  ;;  %s3356_s1 = scalar_lea.vmem %s3355_s28, 256  ;;  %s3804_s14 = int_to_ptr.vmem [resolvable:$true] %s2656_s14 }
 0x279   : > { %s3350_s0 = scalar_lea.vmem %s3804_s14, 128  ;;  %p3357_p1 = scmp.lt.s32.totalorder %s3804_s14, %s3355_s28 }
 0x27a   : > { %p3351_p12 = scmp.ne.s32.totalorder %s3804_s14, %s3350_s0  ;;  %p3358_p2 = scmp.lt.s32.totalorder %s3356_s1, %s3350_s0 }
 0x27b   : > { %3121 = vmatmul.mubr.f32.vlgmr.msra.gmra.mrb[4].mxu0 %v2205_v27 }
 0x27c   : > { %3124 = vmatpush3.msra.mxu0 %v3716_v23  ;;  %3125 = vmatprep.mubr.f32.mxu0 %v2196_v30  ;;  %p3352_p13 = pnand %p3351_p12, %p3534_p4  ;;  %p3359_p3 = por %p3358_p2, %p3357_p1 }
 0x27d   : > { %3128 = vmatprep.subr.mxu0 %v2217_v28 }
 0x27e   : > { %p3353_p0 = pneg %p3352_p13 }
 0x280   : > { %p3360_p5 = pnand %p3359_p3, %p3353_p0 }
 0x283   : > { %3126 = vmatmul.mubr.f32.vlgmr.msra.gmra.mrb[4].mxu0 %v2206_v29  ;;  %v2868_v29 = vld [vmem:[%s3858_s8] ss:$0 sm:$0xff] }
 0x284   : > { %3129 = vmatpush3.msra.mxu0 %v2217_v28  ;;  %3130 = vmatprep.mubr.f32.mxu0 %v2194_v26 }
 0x285   : > { %3133 = vmatprep.subr.mxu0 %v3716_v23 }
 0x28b   : > { %3131 = vmatmul.mubr.f32.vlgmr.msra.gmra.mrb[4].mxu0 %v2204_v24 }
 0x28c   : > { %3134 = vmatpush3.msra.mxu0 %v3716_v23  ;;  %3135 = vmatprep.mubr.f32.mxu0 %v2194_v26 }
 0x293   : > { %3136 = vmatmul.mubr.f32.vlgmr.msra.gmra.mrb[4].mxu0 %v2204_v24 }
 0x2d5   : > { %v1409_v34 = vpop.permute.xlu0 %1408 }
 0x2d6   : > { %v1435_v47 = vsel %vm675_vm4, %v3670_v52, %v1409_v34 }
 0x2d8   : > { %v1407_v10 = vpop.permute.xlu1 %1406 }
 0x2d9   : > { %v1434_v35 = vsel %vm675_vm4, %v1393_v13, %v1407_v10 }
 0x2da   : > { %v1411_v40 = vpop.permute.xlu0 %1410 }
 0x2db   : > { %v1436_v43 = vsel %vm675_vm4, %v3676_v59, %v1411_v40  ;;  %v1589_v59 = vand.u32 4294901760, %v1588_v46 }
 0x2dc   : > { %v1423_v37 = vpop.permute.xlu1 %1422 }
 0x2dd   : > { %v1439_v38 = vsel %vm1438_vm14, %v1434_v35, %v1423_v37  ;;  %v1590_v6 = vsub.f32 %v1588_v46, %v1589_v59 }
 0x2de   : > { %v1455_v39 = vsel %vm1453_vm15, %v1439_v38, 0 }
 0x2df   : > { %v3732_v36 = vand.u32 4294901760, %v1455_v39  ;;  %v1591_v15 = vand.u32 4294901760, %v1590_v6 }
 0x2e0   : > { %v1413_v41 = vpop.permute.xlu1 %1412 }
 0x2e1   : > { %v1535_v42 = vsub.f32 %v1455_v39, %v3732_v36  ;;  %v1437_v60 = vsel %vm675_vm4, %v3696_v14, %v1413_v41 }
 0x2e3   : > { %v1427_v44 = vpop.permute.xlu0 %1426  ;;  %v1536_v45 = vand.u32 4294901760, %v1535_v42 }
 0x2e4   : > { %v1441_v48 = vsel %vm1438_vm14, %v1436_v43, %v1427_v44  ;;  %v1425_v49 = vpop.permute.xlu1 %1424 }
 0x2e5   : > { %v1461_v50 = vsel %vm1453_vm15, %v1441_v48, 0  ;;  %v1440_v51 = vsel %vm1438_vm14, %v1435_v47, %v1425_v49  ;;  %v1537_v53 = vsub.f32 %v1535_v42, %v1536_v45 }
 0x2e6   : > { %v3744_v54 = vand.u32 4294901760, %v1461_v50  ;;  %v1458_v56 = vsel %vm1453_vm15, %v1440_v51, 0 }
 0x2e7   : > { %v1543_v57 = vand.u32 4294901760, %v1458_v56  ;;  %v1538_v58 = vand.u32 4294901760, %v1537_v53 }
 0x2e8   : > { %v1554_v52 = vsub.f32 %v1461_v50, %v3744_v54  ;;  %v1429_v61 = vpop.permute.xlu1 %1428 }
 0x2e9   : > { %v1544_v62 = vsub.f32 %v1458_v56, %v1543_v57  ;;  %v1442_v63 = vsel %vm1438_vm14, %v1437_v60, %v1429_v61  ;;  %3042 = vmatprep.mubr.f32.mxu1 %v1538_v58 }
 0x2ea   : > { %v1464_v0 = vsel %vm1453_vm15, %v1442_v63, 0  ;;  %v1555_v2 = vand.u32 4294901760, %v1554_v52 }
 0x2eb   : > { %v1545_v3 = vand.u32 4294901760, %v1544_v62  ;;  %v1563_v4 = vand.u32 4294901760, %v1464_v0 }
 0x2ec   : > { %v1556_v7 = vsub.f32 %v1554_v52, %v1555_v2 }
 0x2ed   : > { %v1546_v8 = vsub.f32 %v1544_v62, %v1545_v3  ;;  %v1564_v9 = vsub.f32 %v1464_v0, %v1563_v4 }
 0x2ee   : > { %v1557_v14 = vand.u32 4294901760, %v1556_v7 }
 0x2ef   : > { %v1547_v13 = vand.u32 4294901760, %v1546_v8  ;;  %v1565_v17 = vand.u32 4294901760, %v1564_v9 }
 0x2f1   : > { %3043 = vmatmul.mubr.f32.vlgmr.msra.gmra.mrb[4].mxu1 %v1547_v13  ;;  %v1566_v20 = vsub.f32 %v1564_v9, %v1565_v17 }
 0x2f2   : > { %3169 = vmatpush3.bf16.msra.mxu1 %v3701_v16  ;;  %3045 = vmatprep.mubr.f32.mxu1 %v1557_v14  ;;  %v2198_v16 = vand.u32 4294901760, %v3723_v11 }
 0x2f3   : > { %3052 = vmatprep.subr.mxu1 %v1591_v15  ;;  %v1567_v21 = vand.u32 4294901760, %v1566_v20 }
 0x2f5   : > { %3046 = vmatmul.mubr.f32.gmra.mrb[6].mxu1 %v1567_v21 }
 0x2f6   : > { %3053 = vmatpush3.msra.mxu1 %v1591_v15  ;;  %3054 = vmatprep.mubr.f32.mxu1 %v3732_v36 }
 0x2f7   : > { %3171 = vmatprep.subr.bf16.mxu1 %v3706_v18 }
 0x2f9   : > { %3055 = vmatmul.mubr.f32.vlgmr.msra.gmra.mrb[4].mxu1 %v1543_v57 }
 0x2fa   : > { %3173 = vmatpush3.bf16.msra.mxu1 %v3706_v18  ;;  %3057 = vmatprep.mubr.f32.mxu1 %v3744_v54 }
 0x2fb   : > { %3064 = vmatprep.subr.mxu1 %v1588_v46 }
 0x2fd   : > { %3058 = vmatmul.mubr.f32.gmra.mrb[6].mxu1 %v1563_v4 }
 0x2fe   : > { %3065 = vmatpush3.msra.mxu1 %v1588_v46  ;;  %3066 = vmatprep.mubr.f32.mxu1 %v1535_v42 }
 0x2ff   : > { %3175 = vmatprep.subr.bf16.mxu1 %v3672_v55 }
 0x301   : > { %3067 = vmatmul.mubr.f32.vlgmr.msra.gmra.mrb[4].mxu1 %v1544_v62 }
 0x302   : > { %3177 = vmatpush3.bf16.msra.mxu1 %v3672_v55  ;;  %3069 = vmatprep.mubr.f32.mxu1 %v1554_v52 }
 0x303   : > { %3076 = vmatprep.subr.mxu1 %v3686_v1 }
 0x305   : > { %3070 = vmatmul.mubr.f32.gmra.mrb[6].mxu1 %v1564_v9 }
 0x306   : > { %3077 = vmatpush3.msra.mxu1 %v3686_v1  ;;  %3078 = vmatprep.mubr.f32.mxu1 %v1536_v45 }
 0x307   : > { %3179 = vmatprep.subr.bf16.mxu1 %v3708_v19 }
 0x309   : > { %3079 = vmatmul.mubr.f32.vlgmr.msra.gmra.mrb[4].mxu1 %v1545_v3 }
 0x30a   : > { %3181 = vmatpush3.bf16.msra.mxu1 %v3708_v19  ;;  %3081 = vmatprep.mubr.f32.mxu1 %v1555_v2 }
 0x30b   : > { %3088 = vmatprep.subr.mxu1 %v1589_v59 }
 0x30d   : > { %3082 = vmatmul.mubr.f32.gmra.mrb[6].mxu1 %v1565_v17 }
 0x30e   : > { %3089 = vmatpush3.msra.mxu1 %v1589_v59  ;;  %3090 = vmatprep.mubr.f32.mxu1 %v3732_v36 }
 0x30f   : > { %3183 = vmatprep.subr.bf16.mxu1 %v3672_v55 }
 0x311   : > { %3091 = vmatmul.mubr.f32.vlgmr.msra.gmra.mrb[4].mxu1 %v1543_v57 }
 0x312   : > { %3185 = vmatpush3.bf16.msra.mxu1 %v3672_v55  ;;  %3093 = vmatprep.mubr.f32.mxu1 %v3744_v54  ;;  %v2208_v55 = vand.u32 4294901760, %v3721_v32 }
 0x313   : > { %3100 = vmatprep.subr.mxu1 %v3686_v1 }
 0x315   : > { %3094 = vmatmul.mubr.f32.gmra.mrb[6].mxu1 %v1563_v4 }
 0x316   : > { %3101 = vmatpush3.msra.mxu1 %v3686_v1  ;;  %3102 = vmatprep.mubr.f32.mxu1 %v3732_v36  ;;  %v2865_v1 = vld [vmem:[%s3856_s6] ss:$0 sm:$0xff] }
 0x317   : > { %3108 = vmatprep.subr.mxu1 %v3716_v23 }
 0x319   : > { %3103 = vmatmul.mubr.f32.vlgmr.msra.gmra.mrb[4].mxu1 %v1543_v57 }
 0x31a   : > { %3105 = vmatprep.mubr.f32.mxu1 %v3744_v54  ;;  %3109 = vmatpush3.msra.mxu1 %v3716_v23 }
 0x31d   : > { %3106 = vmatmul.mubr.f32.gmra.mrb[6].mxu1 %v1563_v4 }
 0x31e   : > { %3110 = vmatprep.mubr.f32.mxu1 %v2198_v16 }
 0x321   : > { %3111 = vmatmul.mubr.f32.vlgmr.msra.gmra.mrb[8].mxu1 %v2208_v55 }
 0x366   : > { %v3137_v33 = vpop.f32.mrb[4].mxu0 }
 0x367   : > { %v2607_v11 = vpop.f32.mrb[5].mxu0 }
 0x3ec   : > { %v3104_v18 = vpop.f32.mrb[4].mxu1 }
 0x3ed   : > { %v3194_v19 = vadd.f32 %v3104_v18, %v2865_v1  ;;  %v2035_v22 = vpop.f32.mrb[5].mxu1 }
 0x3ef   : > { %v2055_v5 = vmul.f32 %v3194_v19, %v3194_v19 }
 0x3f0   : > { %v3107_v24 = vpop.f32.mrb[6].mxu1 }
 0x3f1   : > { %v2046_v25 = vpop.f32.mrb[7].mxu1  ;;  %v2057_v23 = vsel %vm675_vm4, %v2055_v5, 0.0 }
 0x3f2   : > { %v3195_v26 = vadd.f32 %v2865_v1, %v2046_v25  ;;  %2058 = vadd.xlane.f32.xlu0 %v2057_v23 }
 0x3f4   : > { %v2056_v27 = vmul.f32 %v3195_v26, %v3195_v26  ;;  %v3112_v12 = vpop.f32.mrb[8].mxu1 }
 0x3f5   : > { %v2200_v31 = vpop.f32.mrb[9].mxu1  ;;  %v2211_v30 = vadd.f32 %v3112_v12, %v2868_v29 }
 0x3f6   : > { %v2060_v28 = vsel %vm675_vm4, %v2056_v27, 0.0  ;;  %v2201_v32 = vadd.f32 %v2868_v29, %v2200_v31 }
 0x3f7   : > { %2061 = vadd.xlane.f32.xlu1 %v2060_v28  ;;  %v3197_v10 = vadd.f32 %v3137_v33, %v2211_v30 }
 0x3f8   : > { %v3199_v34 = vadd.f32 %v2607_v11, %v2201_v32 }
 0x3f9   : > { %2618 = vst.msk [vmem:[%s578_s12 + $0x8] sm:$0xff] %vm675_vm4, %v3197_v10 }
 0x3fa   : > { %2617 = vst.msk [vmem:[%s578_s12] sm:$0xff] %vm675_vm4, %v3199_v34 }
 0x47f   : > { %v2059_v35 = vpop.xlane.xlu0 %2058 }
 0x480   : > { %3334 = vrsqrt.f32 %v2059_v35  ;;  %vm2065_vm0 = vcmp.eq.f32.partialorder %v2059_v35, inf  ;;  %v2068_v40 = vand.u32 2147483648, %v2059_v35  ;;  %vm2067_vm1 = vcmp.eq.f32.partialorder %v2059_v35, 0.0 }
 0x484   : > { %v2062_v37 = vpop.xlane.xlu1 %2061 }
 0x485   : > { %3336 = vrsqrt.f32 %v2062_v37  ;;  %vm2072_vm2 = vcmp.eq.f32.partialorder %v2062_v37, inf  ;;  %v2075_v45 = vand.u32 2147483648, %v2062_v37  ;;  %vm2074_vm3 = vcmp.eq.f32.partialorder %v2062_v37, 0.0 }
 0x48a   : > { %v3335_v38 = vpop.eup %3334 }
 0x48b   : > { %v2064_v39 = vmul.f32 %v3335_v38, %v2059_v35 }
 0x48d   : > { %v2066_v36 = vsel %vm2065_vm0, %v2059_v35, %v2064_v39 }
 0x48e   : > { %v2069_v41 = vsel %vm2067_vm1, %v2068_v40, %v2066_v36 }
 0x48f   : > { %v3337_v42 = vpop.eup %3336  ;;  %v2077_v43 = vmax.f32 %v2069_v41, 0.0001 }
 0x490   : > { %v2071_v44 = vmul.f32 %v3337_v42, %v2062_v37 }
 0x491   : > { %3338 = vrcp.f32 %v2077_v43 }
 0x492   : > { %v2073_v46 = vsel %vm2072_vm2, %v2062_v37, %v2071_v44 }
 0x493   : > { %v2076_v47 = vsel %vm2074_vm3, %v2075_v45, %v2073_v46 }
 0x494   : > { %v2078_v48 = vmax.f32 %v2076_v47, 0.0001 }
 0x496   : > { %3340 = vrcp.f32 %v2078_v48 }
 0x49b   : > { %v3339_v49 = vpop.eup %3338 }
 0x49c   : > { %v2080_v50 = vmul.f32 2.828427, %v3339_v49 }
 0x49e   : > { %v2083_v51 = vmul.f32 %v3194_v19, %v2080_v50 }
 0x4a0   : > { %v3341_v53 = vpop.eup %3340  ;;  %v2866_v54 = vmul.f32 -1.442695, %v2083_v51 }
 0x4a1   : > { %v2082_v56 = vmul.f32 2.828427, %v3341_v53 }
 0x4a2   : > { %3342 = vpow2.f32 %v2866_v54 }
 0x4a3   : > { %v2084_v57 = vmul.f32 %v3195_v26, %v2082_v56 }
 0x4a5   : > { %v2867_v58 = vmul.f32 -1.442695, %v2084_v57 }
 0x4a7   : > { %3344 = vpow2.f32 %v2867_v58 }
 0x4ac   : > { %v3343_v59 = vpop.eup %3342 }
 0x4ad   : > { %v2091_v60 = vadd.f32 1.0, %v3343_v59 }
 0x4af   : > { %3346 = vrcp.f32 %v2091_v60 }
 0x4b1   : > { %v3345_v52 = vpop.eup %3344 }
 0x4b2   : > { %v2092_v61 = vadd.f32 1.0, %v3345_v52 }
 0x4b4   : > { %3348 = vrcp.f32 %v2092_v61 }
 0x4b9   : > { %v3347_v62 = vpop.eup %3346 }
 0x4ba   : > { %v2097_v63 = vmul.f32 %v3347_v62, %v2083_v51 }
 0x4bc   : > { %2099 = vst.msk [vmem:[%s568_s24] sm:$0xff] %vm675_vm4, %v2097_v63  ;;  %v2101_v3 = vsel %vm675_vm4, %v2097_v63, 0.0 }
 0x4be   : > { %v3349_v0 = vpop.eup %3348 }
 0x4bf   : > { %v2098_v2 = vmul.f32 %v3349_v0, %v2084_v57 }
 0x4c1   : > { %2100 = vst.msk [vmem:[%s568_s24 + $0x8] sm:$0xff] %vm675_vm4, %v2098_v2  ;;  %v2102_v4 = vsel %vm675_vm4, %v2098_v2, 0.0  ;;  %s2629_s24 = scalar_lea.sflag [#allocation3], %s504_s26 }
 0x4c2   : > { %v2103_v6 = vadd.f32 %v2102_v4, %v2101_v3 }
 0x4c4   : > { %v2104_v7 = vrot.slane %v2103_v6, 4 }
 0x4c6   : > { %v2105_v8 = vadd.f32 %v2104_v7, %v2103_v6 }
 0x4c8   : > { %v2106_v9 = vrot.slane %v2105_v8, 2 }
 0x4ca   : > { %v2107_v13 = vadd.f32 %v2106_v9, %v2105_v8 }
 0x4cc   : > { %v2108_v15 = vrot.slane %v2107_v13, 1 }
 0x4ce   : > { %v2109_v17 = vadd.f32 %v2108_v15, %v2107_v13 }
 0x4d0   : > { %2110 = vst.msk [vmem:[%s506_s13] sm:$0xff] %vm675_vm4, %v2109_v17 }
 0x4d1   : > { %3363 = shalt.err (!%p3360_p5)
}
 0x4d2   : > { %s3364_s26 = scalar_lea.hbm %s3802_s16, 128  ;;  %s3368_s12 = scalar_lea.hbm %s3860_s10, 256 }
 0x4d3   : > { %p3365_p6 = scmp.ne.s32.totalorder %s3802_s16, %s3364_s26  ;;  %p3369_p10 = scmp.lt.u32.totalorder %s3802_s16, %s3860_s10 }
 0x4d4   : > { %p3370_p11 = scmp.lt.u32.totalorder %s3368_s12, %s3364_s26  ;;  %p3372_p13 = scmp.lt.u32.totalorder %s3364_s26, %s3802_s16 }
 0x4d5   : > { %p3366_p7 = pnand %p3365_p6, %p3534_p4 }
 0x4d6   : > { %p3371_p12 = por %p3370_p11, %p3369_p10 }
 0x4d7   : > { %p3367_p9 = pneg %p3366_p7 }
 0x4d8   : > { %p3373_p0 = por %p3372_p13, %p3371_p12 }
 0x4da   : > { %p3374_p1 = pnand %p3373_p0, %p3367_p9 }
 0x4dc   : > { %3377 = shalt.err (!%p3374_p1)
}
 0x4dd   : > { %3244 = dma.vmem_to_hbm [thread:$0]  (%p3534_p4), %s3804_s14, 128, %s3802_s16, %s2629_s24  }
 0x4de PF: > { %p3250_p2 = scmp.ge.s32.totalorder %s3428_s22, 2  ;;  %s2684_s0 = sand.u32 1, %s3408_s17  }
 0x4df   : > { %s2685_s1 = scalar_lea.sflag [#allocation3], %s2684_s0 }
 0x4e0   : > { %p3247_p3 = pnand %p3250_p2, %p3541_p8 }
 0x4e2   : > { %3403 = dma.done.wait (!%p3247_p3), %s2685_s1, 128  }
 0x4e3   : > { %3405 = vsyncadd (!%p3247_p3), %s2685_s1, 4294967168  ;;  %s25_s22 = sadd.s32 1, %s3428_s22   ;;  %s3868_s17 = smov %s3412_s18 }
 0x4e4   : > { %p22_p5 = scmp.ge.s32.totalorder %s25_s22, 4   ;;  %s3869_s18 = smov %s3416_s19 }
 0x4e5   : > { %s3870_s19 = smov %s3547_s30  ;;  %s3871_s20 = smov %s3424_s21 }
 0x4e6   : > { %s3872_s21 = smov %s3874_s25  ;;  %24 = sbr.rel (!%p22_p5) target bundleno = 7 (0x7), region = 121 }
 0x4ed   :  { %2702 = vsyncpa [#allocation3], 1 }
 0x4ee   :  { %2704 = vsyncpa [#allocation3 + $0x1], 1 }

</bundles_post_ra>
